<compile_context>
chip_gen: v7x
topology: tpu7x:2x2x1
jax: 0.10.0
libtpu: 0.0.40
codegen_flags: <defaults>
</compile_context>

<pallas_src>
import jax
import jax.numpy as jnp
from jax.experimental import pallas as pl
from jax.experimental.pallas import tpu as pltpu


def _mesformer_kernel(x_ref, lnw_ref, lnb_ref, invc_ref, fcwt_ref, fcb_ref, o_ref):
    # x_ref:    (BB, C, E) float32 — a block of batch elements
    # lnw_ref:  (1, 1, E)  LayerNormChannel weight (last layer)
    # lnb_ref:  (1, 1, E)  LayerNormChannel bias   (last layer)
    # invc_ref: (1, 1, E)  reciprocal AvgPool1d window counts (2 at edges, 3 inside)
    # fcwt_ref: (E, E)     SQ Linear weight, pre-transposed to (in, out)
    # fcb_ref:  (1, E)     SQ Linear bias
    # o_ref:    (BB*C, E)  output rows
    x = x_ref[...]                                   # (BB, C, E)
    BB, C, E = x.shape

    # ---- LayerNormChannel: normalize over the channel axis (axis=1 of (B, C, E)) ----
    u = jnp.mean(x, axis=1, keepdims=True)           # (BB, 1, E)
    d = x - u
    s = jnp.mean(d * d, axis=1, keepdims=True)       # (BB, 1, E)
    xn = d * jax.lax.rsqrt(s + 1e-5)                 # rsqrt -> EUP slot (co-issues)
    y = lnw_ref[...] * xn + lnb_ref[...]             # (BB, C, E)

    # ---- Pooling token mixer: AvgPool1d(k=3, s=1, pad=1, count_include_pad=False) - y ----
    zero_col = jnp.zeros((BB, C, 1), dtype=y.dtype)
    left = jnp.concatenate([zero_col, y[:, :, :-1]], axis=2)   # y shifted right
    right = jnp.concatenate([y[:, :, 1:], zero_col], axis=2)   # y shifted left
    pooled = (left + y + right) * invc_ref[...]      # multiply by hoisted reciprocals
    xm = x + (pooled - y)                            # residual (dropout = identity)

    # ---- SQLayer1d: x * sigmoid(Linear(x)) — one MXU matmul over all BB*C rows ----
    xm2 = xm.reshape(BB * C, E)                      # merge leading dims (layout no-op)
    z = jnp.dot(xm2, fcwt_ref[...],
                preferred_element_type=jnp.float32) + fcb_ref[...]
    o_ref[...] = (xm2 * jax.nn.sigmoid(z)).astype(o_ref.dtype)


def mesformer_forward(gcn, ln_w, ln_b, fc_w, fc_b, *, batch_block=None):
    """gcn: (B, C, E) float32; params stacked over layers L.

    Returns (B, C*E) exactly like the PyTorch module (eval mode).
    """
    b, c, e = gcn.shape
    L = ln_w.shape[0]

    # Only layer L-1 is live: the PyTorch loop feeds `gcn` to every layer and keeps only
    # the last `out`.  Slice its params host-side (also avoids DMA-ing dead weights).
    lnw = ln_w[L - 1].reshape(1, 1, e).astype(jnp.float32)
    lnb = ln_b[L - 1].reshape(1, 1, e).astype(jnp.float32)
    fcwt = jnp.transpose(fc_w[L - 1]).astype(jnp.float32)     # (E_in, E_out), one-time
    fcb = fc_b[L - 1].reshape(1, e).astype(jnp.float32)

    # AvgPool1d reciprocal counts: 1/2 at the two edges, 1/3 inside.
    counts = jnp.full((e,), 3.0, jnp.float32).at[0].set(2.0).at[-1].set(2.0)
    inv_counts = (1.0 / counts).reshape(1, 1, e)

    # Collapse the batch grid into fat blocks (largest divisor of B that is <= 8).
    # On v7x you may pass batch_block=B//2 so both TensorCores get a block.
    if batch_block is None:
        batch_block = max(d for d in range(1, min(b, 8) + 1) if b % d == 0)
    n_blocks = b // batch_block

    out2d = pl.pallas_call(
        _mesformer_kernel,
        out_shape=jax.ShapeDtypeStruct((b * c, e), jnp.float32),
        grid=(n_blocks,),
        in_specs=[
            pl.BlockSpec((batch_block, c, e), lambda i: (i, 0, 0)),
            pl.BlockSpec((1, 1, e), lambda i: (0, 0, 0)),
            pl.BlockSpec((1, 1, e), lambda i: (0, 0, 0)),
            pl.BlockSpec((1, 1, e), lambda i: (0, 0, 0)),
            pl.BlockSpec((e, e), lambda i: (0, 0)),
            pl.BlockSpec((1, e), lambda i: (0, 0)),
        ],
        out_specs=pl.BlockSpec((batch_block * c, e), lambda i: (i, 0)),
        compiler_params=pltpu.CompilerParams(dimension_semantics=("parallel",)),
    )(gcn, lnw, lnb, inv_counts, fcwt, fcb)

    # (B*C, E) -> (B, C*E) is a row-major relabel (free in XLA).
    return out2d.reshape(b, c * e)


def _reference_forward(gcn, ln_w, ln_b, fc_w, fc_b):
    """Pure-JAX reference mirroring the PyTorch forward (eval mode), all L layers."""
    b, c, e = gcn.shape
    L = ln_w.shape[0]
    out = gcn
    for l in range(L):
        x = gcn                                             # PyTorch loop feeds gcn each layer
        u = jnp.mean(x, axis=1, keepdims=True)
        s = jnp.mean((x - u) ** 2, axis=1, keepdims=True)
        y = ln_w[l][None] * ((x - u) / jnp.sqrt(s + 1e-5)) + ln_b[l][None]
        pad = jnp.pad(y, ((0, 0), (0, 0), (1, 1)))
        win = pad[:, :, :-2] + pad[:, :, 1:-1] + pad[:, :, 2:]
        counts = jnp.full((e,), 3.0).at[0].set(2.0).at[-1].set(2.0)
        pooled = win / counts
        xm = x + (pooled - y)
        gate = jax.nn.sigmoid(jnp.einsum('bce,fe->bcf', xm, fc_w[l]) + fc_b[l][None])
        out = xm * gate
    return out.reshape(b, c * e)


def make_params(key, embed_size, num_layers):
    """Deterministic parameter init matching the module's parameter shapes."""
    E, L = embed_size, num_layers
    k1, k2 = jax.random.split(key)
    # LayerNormChannel: weight=ones, bias=zeros (as in __init__)
    ln_w = jnp.ones((L, 1, E), jnp.float32)
    ln_b = jnp.zeros((L, 1, E), jnp.float32)
    # SQLayer1d Linear(E, E): deterministic pseudo-random init
    bound = 1.0 / jnp.sqrt(E)
    fc_w = jax.random.uniform(k1, (L, E, E), jnp.float32, -bound, bound)
    fc_b = jax.random.uniform(k2, (L, 1, E), jnp.float32, -bound, bound)
    return ln_w, ln_b, fc_w, fc_b


if __name__ == "__main__":
    embed_size = 32      # n (last axis) must equal embed_size for this module
    num_layers = 2
    batch, channels = 2, 8

    key = jax.random.PRNGKey(0)
    k_x, k_p = jax.random.split(key)
    gcn = jax.random.normal(k_x, (batch, channels, embed_size), jnp.float32)
    ln_w, ln_b, fc_w, fc_b = make_params(k_p, embed_size, num_layers)

    out = mesformer_forward(gcn, ln_w, ln_b, fc_w, fc_b)
    out = jax.block_until_ready(out)

    ref = _reference_forward(gcn, ln_w, ln_b, fc_w, fc_b)
    assert out.shape == (batch, channels * embed_size)
    assert jnp.allclose(out, ref, atol=1e-4, rtol=1e-4), "mismatch vs reference"

    print("KERNEL_OK")
</pallas_src>

<mosaic_0001>
module attributes {stable_mosaic.version = 11 : i64} {
  func.func @_mesformer_kernel(%arg0: i32, %arg1: memref<2x8x32xf32, #tpu.memory_space<vmem>>, %arg2: memref<1x1x32xf32, #tpu.memory_space<vmem>>, %arg3: memref<1x1x32xf32, #tpu.memory_space<vmem>>, %arg4: memref<1x1x32xf32, #tpu.memory_space<vmem>>, %arg5: memref<32x32xf32, #tpu.memory_space<vmem>>, %arg6: memref<1x32xf32, #tpu.memory_space<vmem>>, %arg7: memref<16x32xf32, #tpu.memory_space<vmem>>) attributes {dimension_semantics = [#tpu.dimension_semantics<parallel>], iteration_bounds = array<i64: 1>, scalar_prefetch = 0 : i64, scratch_operands = 0 : i64, tpu.core_type = #tpu.core_type<tc>, window_params = [{transform_indices = @transform_0, window_bounds = array<i64: 2, 8, 32>}, {pipeline_mode = #tpu.pipeline_mode<synchronous>, transform_indices = @transform_1, window_bounds = array<i64: 1, 1, 32>}, {pipeline_mode = #tpu.pipeline_mode<synchronous>, transform_indices = @transform_2, window_bounds = array<i64: 1, 1, 32>}, {pipeline_mode = #tpu.pipeline_mode<synchronous>, transform_indices = @transform_3, window_bounds = array<i64: 1, 1, 32>}, {pipeline_mode = #tpu.pipeline_mode<synchronous>, transform_indices = @transform_4, window_bounds = array<i64: 32, 32>}, {pipeline_mode = #tpu.pipeline_mode<synchronous>, transform_indices = @transform_5, window_bounds = array<i64: 1, 32>}, {transform_indices = @transform_6, window_bounds = array<i64: 16, 32>}]} {
    %c0 = arith.constant 0 : index
    %c0_0 = arith.constant 0 : index
    %c0_1 = arith.constant 0 : index
    %0 = vector.load %arg1[%c0, %c0_0, %c0_1] : memref<2x8x32xf32, #tpu.memory_space<vmem>>, vector<2x8x32xf32>
    %cst = arith.constant dense<0.000000e+00> : vector<2x32xf32>
    %1 = vector.multi_reduction <add>, %0, %cst [1] : vector<2x8x32xf32> to vector<2x32xf32>
    %2 = vector.shape_cast %1 : vector<2x32xf32> to vector<2x1x32xf32>
    %cst_2 = arith.constant 8.000000e+00 : f32
    %3 = vector.broadcast %cst_2 : f32 to vector<2x1x32xf32>
    %4 = arith.divf %2, %3 : vector<2x1x32xf32>
    %5 = vector.broadcast %4 : vector<2x1x32xf32> to vector<2x8x32xf32>
    %6 = arith.subf %0, %5 : vector<2x8x32xf32>
    %7 = arith.mulf %6, %6 : vector<2x8x32xf32>
    %cst_3 = arith.constant dense<0.000000e+00> : vector<2x32xf32>
    %8 = vector.multi_reduction <add>, %7, %cst_3 [1] : vector<2x8x32xf32> to vector<2x32xf32>
    %9 = vector.shape_cast %8 : vector<2x32xf32> to vector<2x1x32xf32>
    %cst_4 = arith.constant 8.000000e+00 : f32
    %10 = vector.broadcast %cst_4 : f32 to vector<2x1x32xf32>
    %11 = arith.divf %9, %10 : vector<2x1x32xf32>
    %cst_5 = arith.constant 9.99999974E-6 : f32
    %12 = vector.broadcast %cst_5 : f32 to vector<2x1x32xf32>
    %13 = arith.addf %11, %12 : vector<2x1x32xf32>
    %14 = math.rsqrt %13 : vector<2x1x32xf32>
    %15 = vector.broadcast %14 : vector<2x1x32xf32> to vector<2x8x32xf32>
    %16 = arith.mulf %6, %15 : vector<2x8x32xf32>
    %c0_6 = arith.constant 0 : index
    %c0_7 = arith.constant 0 : index
    %c0_8 = arith.constant 0 : index
    %17 = vector.load %arg2[%c0_6, %c0_7, %c0_8] : memref<1x1x32xf32, #tpu.memory_space<vmem>>, vector<1x1x32xf32>
    %18 = vector.broadcast %17 : vector<1x1x32xf32> to vector<2x8x32xf32>
    %19 = arith.mulf %18, %16 : vector<2x8x32xf32>
    %c0_9 = arith.constant 0 : index
    %c0_10 = arith.constant 0 : index
    %c0_11 = arith.constant 0 : index
    %20 = vector.load %arg3[%c0_9, %c0_10, %c0_11] : memref<1x1x32xf32, #tpu.memory_space<vmem>>, vector<1x1x32xf32>
    %21 = vector.broadcast %20 : vector<1x1x32xf32> to vector<2x8x32xf32>
    %22 = arith.addf %19, %21 : vector<2x8x32xf32>
    %cst_12 = arith.constant 0.000000e+00 : f32
    %23 = vector.broadcast %cst_12 : f32 to vector<2x8x1xf32>
    %24 = vector.extract_strided_slice %22 {offsets = [0, 0, 0], sizes = [2, 8, 31], strides = [1, 1, 1]} : vector<2x8x32xf32> to vector<2x8x31xf32>
    %25 = tpu.concatenate %23, %24 in 2 : vector<2x8x1xf32>, vector<2x8x31xf32> -> vector<2x8x32xf32>
    %26 = vector.extract_strided_slice %22 {offsets = [0, 0, 1], sizes = [2, 8, 31], strides = [1, 1, 1]} : vector<2x8x32xf32> to vector<2x8x31xf32>
    %27 = tpu.concatenate %26, %23 in 2 : vector<2x8x31xf32>, vector<2x8x1xf32> -> vector<2x8x32xf32>
    %28 = arith.addf %25, %22 : vector<2x8x32xf32>
    %29 = arith.addf %28, %27 : vector<2x8x32xf32>
    %c0_13 = arith.constant 0 : index
    %c0_14 = arith.constant 0 : index
    %c0_15 = arith.constant 0 : index
    %30 = vector.load %arg4[%c0_13, %c0_14, %c0_15] : memref<1x1x32xf32, #tpu.memory_space<vmem>>, vector<1x1x32xf32>
    %31 = vector.broadcast %30 : vector<1x1x32xf32> to vector<2x8x32xf32>
    %32 = arith.mulf %29, %31 : vector<2x8x32xf32>
    %33 = arith.subf %32, %22 : vector<2x8x32xf32>
    %34 = arith.addf %0, %33 : vector<2x8x32xf32>
    %35 = vector.shape_cast %34 : vector<2x8x32xf32> to vector<16x32xf32>
    %c0_16 = arith.constant 0 : index
    %c0_17 = arith.constant 0 : index
    %36 = vector.load %arg5[%c0_16, %c0_17] : memref<32x32xf32, #tpu.memory_space<vmem>>, vector<32x32xf32>
    %cst_18 = arith.constant dense<0.000000e+00> : vector<16x32xf32>
    %37 = tpu.matmul %35, %36, %cst_18 {dimension_numbers = #tpu.dot_dimension_numbers<[1], [0], [0], [1], [0, 0, 1, 1], [], []>} : vector<16x32xf32>, vector<32x32xf32>, vector<16x32xf32> -> vector<16x32xf32>
    %c0_19 = arith.constant 0 : index
    %c0_20 = arith.constant 0 : index
    %38 = vector.load %arg6[%c0_19, %c0_20] : memref<1x32xf32, #tpu.memory_space<vmem>>, vector<1x32xf32>
    %39 = vector.broadcast %38 : vector<1x32xf32> to vector<16x32xf32>
    %40 = arith.addf %37, %39 : vector<16x32xf32>
    %41 = arith.negf %40 : vector<16x32xf32>
    %42 = math.exp %41 : vector<16x32xf32>
    %cst_21 = arith.constant 1.000000e+00 : f32
    %43 = vector.broadcast %cst_21 : f32 to vector<16x32xf32>
    %44 = arith.addf %43, %42 : vector<16x32xf32>
    %45 = arith.divf %43, %44 : vector<16x32xf32>
    %46 = arith.mulf %35, %45 : vector<16x32xf32>
    %c0_22 = arith.constant 0 : index
    %c0_23 = arith.constant 0 : index
    %47 = vector.load %arg7[%c0_22, %c0_23] : memref<16x32xf32, #tpu.memory_space<vmem>>, vector<16x32xf32>
    tpu.vector_store %arg7[%c0_22, %c0_23], %46 {strides = array<i32>} : memref<16x32xf32, #tpu.memory_space<vmem>>, vector<16x32xf32>,
    return
  }
  func.func @transform_0(%arg0: i32) -> (i32, i32, i32) {
    %c0_i32 = arith.constant 0 : i32
    %c0_i32_0 = arith.constant 0 : i32
    %c0_i32_1 = arith.constant 0 : i32
    return %arg0, %c0_i32, %c0_i32_0 : i32, i32, i32
  }
  func.func @transform_1(%arg0: i32) -> (i32, i32, i32) {
    %c0_i32 = arith.constant 0 : i32
    %c0_i32_0 = arith.constant 0 : i32
    %c0_i32_1 = arith.constant 0 : i32
    %c0_i32_2 = arith.constant 0 : i32
    return %c0_i32, %c0_i32_0, %c0_i32_1 : i32, i32, i32
  }
  func.func @transform_2(%arg0: i32) -> (i32, i32, i32) {
    %c0_i32 = arith.constant 0 : i32
    %c0_i32_0 = arith.constant 0 : i32
    %c0_i32_1 = arith.constant 0 : i32
    %c0_i32_2 = arith.constant 0 : i32
    return %c0_i32, %c0_i32_0, %c0_i32_1 : i32, i32, i32
  }
  func.func @transform_3(%arg0: i32) -> (i32, i32, i32) {
    %c0_i32 = arith.constant 0 : i32
    %c0_i32_0 = arith.constant 0 : i32
    %c0_i32_1 = arith.constant 0 : i32
    %c0_i32_2 = arith.constant 0 : i32
    return %c0_i32, %c0_i32_0, %c0_i32_1 : i32, i32, i32
  }
  func.func @transform_4(%arg0: i32) -> (i32, i32) {
    %c0_i32 = arith.constant 0 : i32
    %c0_i32_0 = arith.constant 0 : i32
    %c0_i32_1 = arith.constant 0 : i32
    return %c0_i32, %c0_i32_0 : i32, i32
  }
  func.func @transform_5(%arg0: i32) -> (i32, i32) {
    %c0_i32 = arith.constant 0 : i32
    %c0_i32_0 = arith.constant 0 : i32
    %c0_i32_1 = arith.constant 0 : i32
    return %c0_i32, %c0_i32_0 : i32, i32
  }
  func.func @transform_6(%arg0: i32) -> (i32, i32) {
    %c0_i32 = arith.constant 0 : i32
    %c0_i32_0 = arith.constant 0 : i32
    return %arg0, %c0_i32 : i32, i32
  }
}

</mosaic_0001>

<bundles_post_ra>
// kernel: tpu_custom_call.1
= control target key start
LH: loop header
LB: loop body
LE: loop exit
PB: predicated region body
PF: predicated region fallthrough
CT: control target
= control target key end

     0   :  { %11 = vsyncpa [#allocation3], 0  ;;  %s520_s0 = inlined_call_operand.hbm [shape: f32[2,8,32], index: 0, kind: input, shape index: {}]   ;;  %s521_s1 = inlined_call_operand.vmem [shape: f32[1,1,32], index: 1, kind: input, shape index: {}]   ;;  %s522_s2 = inlined_call_operand.vmem [shape: f32[1,1,32], index: 2, kind: input, shape index: {}]   ;;  %s523_s3 = inlined_call_operand.vmem [shape: f32[1,1,32], index: 3, kind: input, shape index: {}]   ;;  %s524_s4 = inlined_call_operand.hbm [shape: f32[32,32], index: 4, kind: input, shape index: {}]   ;;  %s525_s5 = inlined_call_operand.vmem [shape: f32[1,32], index: 5, kind: input, shape index: {}]   ;;  %s526_s6 = inlined_call_operand.hbm [shape: f32[16,32], index: 6, kind: output, shape index: {}]  }
   0x1   :  { %12 = vsyncpa [#allocation6], 0 }
   0x2   :  { %13 = vsyncpa [#allocation4], 0  ;;  %s403_s21 = smov [#allocation2]   ;;  %s331_s25 = scalar_lea.hbm %s520_s0, 256 }
   0x3   :  { %s19_s22 = sshll.u32 %s403_s21, 4  ;;  %p332_p0 = scmp.ne.s32.totalorder %s520_s0, %s331_s25  ;;  %s20_s22 = int_to_ptr.vmem [resolvable:$true] %s19_s22 }
   0x4   :  { %p335_p1 = scmp.lt.u32.totalorder %s331_s25, %s520_s0 }
   0x6   :  { %p337_p2 = pnand %p335_p1, %p332_p0 }
   0x8   :  { %340 = shalt.err (!%p337_p2)
}
   0x9   :  { %s341_s30 = scalar_lea.vmem %s20_s22, 256  ;;  %p346_p4 = scmp.lt.s32.totalorder %s20_s22, %s20_s22 }
   0xa   :  { %p342_p3 = scmp.ne.s32.totalorder %s20_s22, %s341_s30  ;;  %p347_p5 = scmp.lt.s32.totalorder %s341_s30, %s341_s30 }
   0xc   :  { %p348_p6 = por %p347_p5, %p346_p4 }
   0xe   :  { %p349_p7 = pnand %p348_p6, %p342_p3 }
  0x10   :  { %352 = shalt.err (!%p349_p7)
}
  0x11   :  { %s404_s7 = smov 128   ;;  %s405_s8 = smov 8  }
  0x12   :  { %25 = dma.hbm_to_vmem [thread:$0]  %s520_s0, 256, %s20_s22, [#allocation3], %s404_s7, %s404_s7, %s405_s8  }
  0x13   :  { %s406_s11 = smov [#allocation5]   ;;  %s353_s15 = scalar_lea.hbm %s524_s4, 512 }
  0x14   :  { %s37_s12 = sshll.u32 %s406_s11, 4  ;;  %p354_p8 = scmp.ne.s32.totalorder %s524_s4, %s353_s15  ;;  %s38_s12 = int_to_ptr.vmem [resolvable:$true] %s37_s12 }
  0x15   :  { %p357_p9 = scmp.lt.u32.totalorder %s353_s15, %s524_s4 }
  0x17   :  { %p359_p10 = pnand %p357_p9, %p354_p8 }
  0x19   :  { %362 = shalt.err (!%p359_p10)
}
  0x1a   :  { %s363_s20 = scalar_lea.vmem %s38_s12, 512  ;;  %p368_p12 = scmp.lt.s32.totalorder %s38_s12, %s38_s12 }
  0x1b   :  { %p364_p11 = scmp.ne.s32.totalorder %s38_s12, %s363_s20  ;;  %p369_p13 = scmp.lt.s32.totalorder %s363_s20, %s363_s20 }
  0x1d   :  { %p370_p0 = por %p369_p13, %p368_p12 }
  0x1f   :  { %p371_p1 = pnand %p370_p0, %p364_p11 }
  0x21   :  { %374 = shalt.err (!%p371_p1)
}
  0x22   :  { %43 = dma.hbm_to_vmem [thread:$0]  %s524_s4, 512, %s38_s12, [#allocation6], %s404_s7, %s404_s7, %s405_s8  }
  0x23   :  { %397 = dma.done.wait [#allocation3], 256  }
  0x24   :  { %398 = vsyncadd [#allocation3], 4294967040 }
  0x25   :  { %399 = dma.done.wait [#allocation6], 512  }
  0x26   :  { %400 = vsyncadd [#allocation6], 4294966784  ;;  %vm54_vm0 = vcmask 261120   ;;  %v475_v0 = vld [vmem:[#allocation2] sm:$0xff]  ;;  %v479_v2 = vld [vmem:[#allocation2 + $0x8] sm:$0xff]  ;;  %s407_s25 = smov 1  }
  0x27   :  { %v55_v1 = vsel %vm54_vm0, %v475_v0, 0.0  ;;  %v62_v4 = vsel %vm54_vm0, %v479_v2, 0.0  ;;  %v153_v40 = vld [vmem:[#allocation5] sm:$0xff]  ;;  %v154_v41 = vld [vmem:[#allocation5 + $0x8] sm:$0xff]  ;;  %v279_v44 = vld [vmem:[%s521_s1] ss:$0 sm:$0xff] }
  0x28   :  { %v56_v3 = vrot.slane %v55_v1, 4  ;;  %v63_v5 = vrot.slane %v62_v4, 4  ;;  %v304_v42 = vpack.c.bf16 %v154_v41, %v153_v40  ;;  %v280_v47 = vld [vmem:[%s522_s2] ss:$0 sm:$0xff]  ;;  %v156_v50 = vld [vmem:[#allocation5 + $0x18] sm:$0xff]  ;;  %s408_s1 = smov 127  }
  0x29   :  { %v155_v49 = vld [vmem:[#allocation5 + $0x10] sm:$0xff]  ;;  %vm124_vm1 = vcmask 7168   ;;  %vm133_vm2 = vcmask 252928   ;;  %s409_s28 = smov [#allocation7]  }
  0x2a   :  { %v57_v6 = vadd.f32 %v56_v3, %v55_v1  ;;  %v64_v7 = vadd.f32 %v63_v5, %v62_v4  ;;  %305 = vmatprep.subr.bf16.mxu0 %v304_v42  ;;  %v308_v52 = vpack.c.bf16 %v156_v50, %v155_v49  ;;  %v281_v61 = vld [vmem:[%s523_s3] ss:$0 sm:$0xff]  ;;  %s266_s29 = sshll.u32 %s409_s28, 4  ;;  %s267_s29 = int_to_ptr.vmem [resolvable:$true] %s266_s29 }
  0x2b   :  { %307 = vmatpush3.bf16.msra.mxu0 %v304_v42  ;;  %p380_p3 = scmp.lt.s32.totalorder %s267_s29, %s267_s29 }
  0x2c   :  { %v58_v8 = vrot.slane %v57_v6, 2  ;;  %v65_v9 = vrot.slane %v64_v7, 2  ;;  %309 = vmatprep.subr.bf16.mxu0 %v308_v52 }
  0x2e   :  { %v59_v10 = vadd.f32 %v58_v8, %v57_v6  ;;  %v66_v11 = vadd.f32 %v65_v9, %v64_v7 }
  0x2f   :  { %311 = vmatpush3.bf16.msra.mxu0 %v308_v52 }
  0x30   :  { %v60_v12 = vrot.slane %v59_v10, 1  ;;  %v67_v13 = vrot.slane %v66_v11, 1 }
  0x32   :  { %v61_v14 = vadd.f32 %v60_v12, %v59_v10  ;;  %v68_v15 = vadd.f32 %v67_v13, %v66_v11  ;;  %v282_v13 = vld [vmem:[%s525_s5] ss:$0 sm:$0xff]  ;;  %s375_s5 = scalar_lea.vmem %s267_s29, 256 }
  0x33   :  { %p376_p2 = scmp.ne.s32.totalorder %s267_s29, %s375_s5  ;;  %p381_p4 = scmp.lt.s32.totalorder %s375_s5, %s375_s5 }
  0x34   :  { %v70_v16 = vmul.f32 0.125, %v61_v14  ;;  %v71_v17 = vmul.f32 0.125, %v68_v15 }
  0x35   :  { %p382_p5 = por %p381_p4, %p380_p3 }
  0x36   :  { %v72_v18 = vsub.f32 %v475_v0, %v70_v16  ;;  %v73_v19 = vsub.f32 %v479_v2, %v71_v17 }
  0x37   :  { %p383_p6 = pnand %p382_p5, %p376_p2 }
  0x38   :  { %v74_v20 = vmul.f32 %v72_v18, %v72_v18  ;;  %v75_v21 = vmul.f32 %v73_v19, %v73_v19 }
  0x3a   :  { %v76_v22 = vsel %vm54_vm0, %v74_v20, 0.0  ;;  %v83_v24 = vsel %vm54_vm0, %v75_v21, 0.0 }
  0x3b   :  { %v77_v23 = vrot.slane %v76_v22, 4  ;;  %v84_v25 = vrot.slane %v83_v24, 4 }
  0x3d   :  { %v78_v26 = vadd.f32 %v77_v23, %v76_v22  ;;  %v85_v27 = vadd.f32 %v84_v25, %v83_v24 }
  0x3f   :  { %v79_v28 = vrot.slane %v78_v26, 2  ;;  %v86_v29 = vrot.slane %v85_v27, 2 }
  0x41   :  { %v80_v30 = vadd.f32 %v79_v28, %v78_v26  ;;  %v87_v31 = vadd.f32 %v86_v29, %v85_v27 }
  0x43   :  { %v81_v32 = vrot.slane %v80_v30, 1  ;;  %v88_v33 = vrot.slane %v87_v31, 1 }
  0x45   :  { %v82_v34 = vadd.f32 %v81_v32, %v80_v30  ;;  %v89_v35 = vadd.f32 %v88_v33, %v87_v31 }
  0x47   :  { %v90_v36 = vmul.f32 0.125, %v82_v34  ;;  %v91_v37 = vmul.f32 0.125, %v89_v35 }
  0x49   :  { %v92_v38 = vadd.f32 1e-05, %v90_v36  ;;  %v93_v39 = vadd.f32 1e-05, %v91_v37 }
  0x4b   :  { %319 = vrsqrt.f32 %v92_v38 }
  0x4c   :  { %321 = vrsqrt.f32 %v93_v39 }
  0x55   :  { %v320_v43 = vpop.eup %319 }
  0x56   :  { %v322_v45 = vpop.eup %321  ;;  %v96_v46 = vmul.f32 %v320_v43, %v72_v18 }
  0x57   :  { %v97_v48 = vmul.f32 %v322_v45, %v73_v19 }
  0x58   :  { %v105_v51 = vmul.f32 %v279_v44, %v96_v46 }
  0x59   :  { %v106_v53 = vmul.f32 %v279_v44, %v97_v48 }
  0x5a   :  { %v114_v54 = vadd.f32 %v280_v47, %v105_v51 }
  0x5b   :  { %v115_v55 = vadd.f32 %v280_v47, %v106_v53 }
  0x5c   :  { %118 = vrot.lane.b32.xlu0 %v114_v54, %s407_s25  ;;  %127 = vrot.lane.b32.xlu1 %v114_v54, %s408_s1 }
  0x60   :  { %120 = vrot.lane.b32.xlu0 %v115_v55, %s407_s25  ;;  %129 = vrot.lane.b32.xlu1 %v115_v55, %s408_s1 }
  0xce   :  { %v119_v56 = vpop.permute.xlu0 %118  ;;  %v128_v57 = vpop.permute.xlu1 %127 }
  0xcf   :  { %v125_v58 = vsel %vm124_vm1, 0.0, %v119_v56  ;;  %v134_v59 = vsel %vm133_vm2, %v128_v57, 0.0 }
  0xd0   :  { %v136_v60 = vadd.f32 %v125_v58, %v114_v54 }
  0xd2   :  { %v138_v62 = vadd.f32 %v136_v60, %v134_v59  ;;  %v121_v63 = vpop.permute.xlu0 %120  ;;  %v130_v1 = vpop.permute.xlu1 %129 }
  0xd3   :  { %v126_v3 = vsel %vm124_vm1, 0.0, %v121_v63  ;;  %v135_v4 = vsel %vm133_vm2, %v130_v1, 0.0 }
  0xd4   :  { %v147_v5 = vmul.f32 %v281_v61, %v138_v62  ;;  %v137_v6 = vadd.f32 %v126_v3, %v115_v55 }
  0xd6   :  { %v139_v7 = vadd.f32 %v137_v6, %v135_v4  ;;  %v149_v8 = vsub.f32 %v147_v5, %v114_v54 }
  0xd8   :  { %v148_v9 = vmul.f32 %v281_v61, %v139_v7  ;;  %v151_v10 = vadd.f32 %v149_v8, %v475_v0 }
  0xda   :  { %v150_v11 = vsub.f32 %v148_v9, %v115_v55  ;;  %301 = vmatprep.mubr.msk.f32.mxu0 %vm54_vm0, %v151_v10 }
  0xdc   :  { %v152_v12 = vadd.f32 %v150_v11, %v479_v2 }
  0xde   :  { %302 = vmatmul.mubr.msk.f32.vlgmr.msra.gmra.mrb[0].mxu0 %vm54_vm0, %v152_v12 }
 0x1b1   :  { %v303_v14 = vpop.f32.mrb[0].mxu0 }
 0x1b2   :  { %v242_v15 = vadd.f32 %v303_v14, %v282_v13  ;;  %v236_v16 = vpop.f32.mrb[1].mxu0 }
 0x1b3   :  { %v237_v17 = vadd.f32 %v282_v13, %v236_v16 }
 0x1b4   :  { %v286_v18 = vmul.f32 -1.442695, %v242_v15 }
 0x1b5   :  { %v285_v19 = vmul.f32 -1.442695, %v237_v17 }
 0x1b6   :  { %323 = vpow2.f32 %v286_v18 }
 0x1b7   :  { %325 = vpow2.f32 %v285_v19 }
 0x1c0   :  { %v324_v0 = vpop.eup %323 }
 0x1c1   :  { %v326_v20 = vpop.eup %325  ;;  %v252_v21 = vadd.f32 1.0, %v324_v0 }
 0x1c2   :  { %v251_v22 = vadd.f32 1.0, %v326_v20 }
 0x1c3   :  { %327 = vrcp.f32 %v252_v21 }
 0x1c4   :  { %329 = vrcp.f32 %v251_v22 }
 0x1cd   :  { %v328_v2 = vpop.eup %327 }
 0x1ce   :  { %v330_v23 = vpop.eup %329  ;;  %v258_v24 = vmul.f32 %v328_v2, %v152_v12 }
 0x1cf   :  { %v257_v25 = vmul.f32 %v330_v23, %v151_v10 }
 0x1d0   :  { %260 = vst.msk [vmem:[#allocation7 + $0x8] sm:$0xff] %vm54_vm0, %v258_v24 }
 0x1d1   :  { %259 = vst.msk [vmem:[#allocation7] sm:$0xff] %vm54_vm0, %v257_v25 }
 0x1d2   :  { %386 = shalt.err (!%p383_p6)
}
 0x1d3   :  { %s387_s10 = scalar_lea.hbm %s526_s6, 256 }
 0x1d4   :  { %p388_p7 = scmp.ne.s32.totalorder %s526_s6, %s387_s10  ;;  %p391_p8 = scmp.lt.u32.totalorder %s387_s10, %s526_s6 }
 0x1d6   :  { %p393_p9 = pnand %p391_p8, %p388_p7 }
 0x1d8   :  { %396 = shalt.err (!%p393_p9)
}
 0x1d9   :  { %272 = dma.vmem_to_hbm [thread:$0]  %s267_s29, 256, %s526_s6, [#allocation4], %s404_s7, %s404_s7, %s405_s8  }
 0x1da   :  { %401 = dma.done.wait [#allocation4], 256  }
 0x1db   :  { %402 = vsyncadd [#allocation4], 4294967040 }
 0x1dc   :  { %276 = vsyncpa [#allocation3], 1 }
 0x1dd   :  { %277 = vsyncpa [#allocation6], 1 }
 0x1de   :  { %278 = vsyncpa [#allocation4], 1 }

</bundles_post_ra>
